<compile_context>
chip_gen: v7x
topology: tpu7x:2x2x1
jax: 0.10.0
libtpu: 0.0.40
codegen_flags: <defaults>
</compile_context>

<pallas_src>
import functools

import jax
import jax.numpy as jnp
from jax import lax
from jax.experimental import pallas as pl
from jax.experimental.pallas import tpu as pltpu

LANE_PAD = 128  # lane-dense padding unit


def _round_up(x, m):
    return ((x + m - 1) // m) * m


def _pick_batch_tile(B):
    # Small batches: one grid step covering the (8-aligned) batch.
    if B <= 128:
        return _round_up(max(B, 1), 8)
    # Larger batches: >=2 grid steps (feeds both v7x TensorCores through the
    # "parallel" batch axis), 128-aligned tiles capped at 512 rows.
    half = _round_up((B + 1) // 2, 128)
    return min(512, half)


# ----------------------------------------------------------------------------
# Fused Pallas kernel: whole forward pass for one batch tile
# ----------------------------------------------------------------------------
def _autoencoder_kernel(x_ref, *refs, cls_lane):
    out_ref = refs[-1]
    p = refs[:-1]  # 9 layers x (W_bf16, b_f32), BN already folded into (W, b)

    def linear(h_bf16, li):
        return jnp.dot(h_bf16, p[2 * li][...],
                       preferred_element_type=jnp.float32) + p[2 * li + 1][...]

    # --- encoder: layers 0-2 (Linear+ReLU, BN folded into next layer), 3 (Linear) ---
    h = x_ref[...]                                   # bf16 (pre-cast in wrapper)
    for li in range(4):
        y = linear(h, li)
        if li < 3:
            y = jnp.maximum(y, 0.0)
        h = y.astype(jnp.bfloat16)                   # carried activation stays bf16
    bottleneck = h                                   # (TB, bneck_pad), padded lanes == 0

    # --- decoder: layers 4-6 (Linear+ReLU), 7 (Linear -> reconstruction head) ---
    for li in range(4, 8):
        y = linear(h, li)
        if li < 7:
            h = jnp.maximum(y, 0.0).astype(jnp.bfloat16)
        else:
            recon = y                                # f32 (TB, out_pad), padded lanes == 0

    # --- classifier head: Linear (real column placed at cls_lane) + Sigmoid ---
    logit = linear(bottleneck, 8)
    cls = 0.5 * (jnp.tanh(0.5 * logit) + 1.0)        # sigmoid, single EUP op

    # Merge both heads into one lane-dense slab: classifier value at lane cls_lane.
    lane = lax.broadcasted_iota(jnp.int32, out_ref.shape, 1)
    out_ref[...] = jnp.where(lane == cls_lane, cls, recon).astype(out_ref.dtype)


# ----------------------------------------------------------------------------
# Wrapper: single pallas_call, batch tiled over the grid
# ----------------------------------------------------------------------------
def autoencoder_forward(params, x):
    flat = params["flat"]
    input_dim = params["input_dim"]
    out_pad = params["out_pad"]
    cls_lane = params["cls_lane"]

    B, Din = x.shape
    TB = _pick_batch_tile(B)
    B_pad = _round_up(B, TB)

    xp = x.astype(jnp.bfloat16)                      # bit-identical (kernel used bf16 matmul)
    if B_pad != B:
        xp = jnp.pad(xp, ((0, B_pad - B), (0, 0)))

    kernel = functools.partial(_autoencoder_kernel, cls_lane=cls_lane)

    # x tiles over the batch; every parameter is a full-array VMEM-resident block.
    in_specs = [pl.BlockSpec((TB, Din), lambda i: (i, 0))]
    for prm in flat:
        in_specs.append(pl.BlockSpec(prm.shape, lambda i: (0, 0)))

    out = pl.pallas_call(
        kernel,
        out_shape=jax.ShapeDtypeStruct((B_pad, out_pad), jnp.float32),
        grid=(B_pad // TB,),
        in_specs=in_specs,
        out_specs=pl.BlockSpec((TB, out_pad), lambda i: (i, 0)),
        compiler_params=pltpu.CompilerParams(dimension_semantics=("parallel",)),
    )(xp, *flat)

    # NOTE: for large B the packed slab `out` can be consumed directly downstream to
    # avoid an extra HBM pass from these slices.
    reconstruction = out[:B, :input_dim]
    classification = out[:B, cls_lane:cls_lane + 1]
    return reconstruction, classification


# ----------------------------------------------------------------------------
# Parameters: PyTorch-scale init, eval-mode BN folded into the next layer, padded
# ----------------------------------------------------------------------------
def make_autoencoder_params(key, input_dim, bottleneck_dim, eps=1e-5):
    bneck_pad = max(_round_up(bottleneck_dim, LANE_PAD), LANE_PAD)
    out_pad = max(_round_up(input_dim + 1, LANE_PAD), LANE_PAD)
    cls_lane = input_dim                             # classifier lane in the merged slab

    # (din, dout, din_pad, dout_pad) per layer; layer 8 is the classifier head.
    dims = [
        (input_dim, 256, input_dim, 256),
        (256, 128, 256, 128),
        (128, 64, 128, 64),
        (64, bottleneck_dim, 64, bneck_pad),
        (bottleneck_dim, 64, bneck_pad, 64),
        (64, 128, 64, 128),
        (128, 256, 128, 256),
        (256, input_dim, 256, out_pad),
        (bottleneck_dim, 1, bneck_pad, out_pad),
    ]
    bn_layers = (True, True, True, False, True, True, True, False, False)
    # Producer of each layer's input (layers 4 and 8 consume the bottleneck = layer 3).
    producer = [None, 0, 1, 2, 3, 4, 5, 6, 3]

    # Raw torch-semantics parameters (used by the unfolded f32 reference).
    raw = []
    keys = jax.random.split(key, len(dims))
    for (din, dout, _, _), bn, k in zip(dims, bn_layers, keys):
        kw, kb, kg, kbeta, km, kv = jax.random.split(k, 6)
        bound = 1.0 / (float(din) ** 0.5)
        layer = {
            "W": jax.random.uniform(kw, (din, dout), jnp.float32, -bound, bound),
            "b": jax.random.uniform(kb, (1, dout), jnp.float32, -bound, bound),
            "bn": bn,
        }
        if bn:
            layer["gamma"] = 1.0 + 0.1 * jax.random.normal(kg, (1, dout), jnp.float32)
            layer["beta"] = 0.1 * jax.random.normal(kbeta, (1, dout), jnp.float32)
            layer["rmean"] = 0.1 * jax.random.normal(km, (1, dout), jnp.float32)
            layer["rvar"] = jnp.abs(jax.random.normal(kv, (1, dout), jnp.float32)) + 0.5
        raw.append(layer)

    def bn_scale_shift(layer):
        scale = layer["gamma"] / jnp.sqrt(layer["rvar"] + eps)   # (1, d)
        shift = layer["beta"] - layer["rmean"] * scale
        return scale, shift

    # Fold BN of layer i into layer i+1 (f32), zero-pad to lane-dense shapes,
    # cast weights to bf16 once at the end.
    flat_bf16, flat_f32 = [], []
    for li, ((din, dout, din_pad, dout_pad), layer) in enumerate(zip(dims, raw)):
        W, b = layer["W"], layer["b"]
        prod = producer[li]
        if prod is not None and raw[prod]["bn"]:
            scale, shift = bn_scale_shift(raw[prod])             # (1, din)
            b = b + shift @ W                                    # with the ORIGINAL W
            W = scale.reshape(din, 1) * W
        col = cls_lane if li == 8 else 0                         # classifier column placement
        Wp = jnp.zeros((din_pad, dout_pad), jnp.float32).at[:din, col:col + dout].set(W)
        bp = jnp.zeros((1, dout_pad), jnp.float32).at[:, col:col + dout].set(b)
        flat_f32 += [Wp, bp]
        flat_bf16 += [Wp.astype(jnp.bfloat16), bp]               # weights bf16, bias f32

    return {"flat": flat_bf16, "flat_f32": flat_f32, "raw": raw,
            "input_dim": input_dim, "bottleneck_dim": bottleneck_dim,
            "out_pad": out_pad, "cls_lane": cls_lane, "eps": eps}


# ----------------------------------------------------------------------------
# Pure-jnp references
# ----------------------------------------------------------------------------
def _folded_forward(flat, x, input_dim, cls_lane, act_dtype):
    """Forward on the folded/padded parameter list (mirrors the kernel math)."""
    h = x.astype(act_dtype)
    for li in range(4):
        y = jnp.dot(h, flat[2 * li], preferred_element_type=jnp.float32) + flat[2 * li + 1]
        if li < 3:
            y = jnp.maximum(y, 0.0)
        h = y.astype(act_dtype)
    bneck = h
    for li in range(4, 8):
        y = jnp.dot(h, flat[2 * li], preferred_element_type=jnp.float32) + flat[2 * li + 1]
        if li < 7:
            h = jnp.maximum(y, 0.0).astype(act_dtype)
        else:
            recon = y
    logit = jnp.dot(bneck, flat[16], preferred_element_type=jnp.float32) + flat[17]
    cls = 1.0 / (1.0 + jnp.exp(-logit))
    return recon[:, :input_dim], cls[:, cls_lane:cls_lane + 1]


def autoencoder_forward_torch_ref(params, x):
    """Unfolded f32 forward with the exact PyTorch order Linear -> ReLU -> BN (eval)."""
    raw, eps = params["raw"], params["eps"]

    def layer(h, li, relu):
        L = raw[li]
        y = h @ L["W"] + L["b"]
        if relu:
            y = jnp.maximum(y, 0.0)
        if L["bn"]:
            scale = L["gamma"] / jnp.sqrt(L["rvar"] + eps)
            y = (y - L["rmean"]) * scale + L["beta"]
        return y

    h = x
    for li in range(4):
        h = layer(h, li, relu=(li < 3))
    bneck = h
    for li in range(4, 8):
        h = layer(h, li, relu=(li < 7))
    recon = h
    logit = bneck @ raw[8]["W"] + raw[8]["b"]
    cls = 1.0 / (1.0 + jnp.exp(-logit))
    return recon, cls


if __name__ == "__main__":
    key = jax.random.PRNGKey(0)
    kp, kx = jax.random.split(key)

    batch, input_dim, bottleneck_dim = 8, 32, 16
    params = make_autoencoder_params(kp, input_dim, bottleneck_dim)
    x = jax.random.normal(kx, (batch, input_dim), jnp.float32)

    recon, cls = autoencoder_forward(params, x)
    recon = jax.block_until_ready(recon)
    cls = jax.block_until_ready(cls)
    assert recon.shape == (batch, input_dim)
    assert cls.shape == (batch, 1)

    # Tight check: kernel vs pure-jnp forward on the same folded bf16 parameters.
    r_ref, c_ref = _folded_forward(params["flat"], x, input_dim,
                                   params["cls_lane"], jnp.bfloat16)
    assert jnp.allclose(recon, r_ref, atol=2e-3, rtol=2e-3)
    assert jnp.allclose(cls, c_ref, atol=2e-3, rtol=2e-3)

    # Semantic check: BN-fold + zero padding are exact vs torch-order f32 math.
    rf, cf = _folded_forward(params["flat_f32"], x, input_dim,
                             params["cls_lane"], jnp.float32)
    rt, ct = autoencoder_forward_torch_ref(params, x)
    assert jnp.allclose(rf, rt, atol=1e-4, rtol=1e-4)
    assert jnp.allclose(cf, ct, atol=1e-4, rtol=1e-4)

    print("KERNEL_OK")
</pallas_src>

<mosaic_0001>
module attributes {stable_mosaic.version = 11 : i64} {
  func.func @_autoencoder_kernel(%arg0: i32, %arg1: memref<8x32xbf16, #tpu.memory_space<vmem>>, %arg2: memref<32x256xbf16, #tpu.memory_space<vmem>>, %arg3: memref<1x256xf32, #tpu.memory_space<vmem>>, %arg4: memref<256x128xbf16, #tpu.memory_space<vmem>>, %arg5: memref<1x128xf32, #tpu.memory_space<vmem>>, %arg6: memref<128x64xbf16, #tpu.memory_space<vmem>>, %arg7: memref<1x64xf32, #tpu.memory_space<vmem>>, %arg8: memref<64x128xbf16, #tpu.memory_space<vmem>>, %arg9: memref<1x128xf32, #tpu.memory_space<vmem>>, %arg10: memref<128x64xbf16, #tpu.memory_space<vmem>>, %arg11: memref<1x64xf32, #tpu.memory_space<vmem>>, %arg12: memref<64x128xbf16, #tpu.memory_space<vmem>>, %arg13: memref<1x128xf32, #tpu.memory_space<vmem>>, %arg14: memref<128x256xbf16, #tpu.memory_space<vmem>>, %arg15: memref<1x256xf32, #tpu.memory_space<vmem>>, %arg16: memref<256x128xbf16, #tpu.memory_space<vmem>>, %arg17: memref<1x128xf32, #tpu.memory_space<vmem>>, %arg18: memref<128x128xbf16, #tpu.memory_space<vmem>>, %arg19: memref<1x128xf32, #tpu.memory_space<vmem>>, %arg20: memref<8x128xf32, #tpu.memory_space<vmem>>) attributes {dimension_semantics = [#tpu.dimension_semantics<parallel>], iteration_bounds = array<i64: 1>, scalar_prefetch = 0 : i64, scratch_operands = 0 : i64, tpu.core_type = #tpu.core_type<tc>, window_params = [{transform_indices = @transform_0, window_bounds = array<i64: 8, 32>}, {pipeline_mode = #tpu.pipeline_mode<synchronous>, transform_indices = @transform_1, window_bounds = array<i64: 32, 256>}, {pipeline_mode = #tpu.pipeline_mode<synchronous>, transform_indices = @transform_2, window_bounds = array<i64: 1, 256>}, {pipeline_mode = #tpu.pipeline_mode<synchronous>, transform_indices = @transform_3, window_bounds = array<i64: 256, 128>}, {pipeline_mode = #tpu.pipeline_mode<synchronous>, transform_indices = @transform_4, window_bounds = array<i64: 1, 128>}, {pipeline_mode = #tpu.pipeline_mode<synchronous>, transform_indices = @transform_5, window_bounds = array<i64: 128, 64>}, {pipeline_mode = #tpu.pipeline_mode<synchronous>, transform_indices = @transform_6, window_bounds = array<i64: 1, 64>}, {pipeline_mode = #tpu.pipeline_mode<synchronous>, transform_indices = @transform_7, window_bounds = array<i64: 64, 128>}, {pipeline_mode = #tpu.pipeline_mode<synchronous>, transform_indices = @transform_8, window_bounds = array<i64: 1, 128>}, {pipeline_mode = #tpu.pipeline_mode<synchronous>, transform_indices = @transform_9, window_bounds = array<i64: 128, 64>}, {pipeline_mode = #tpu.pipeline_mode<synchronous>, transform_indices = @transform_10, window_bounds = array<i64: 1, 64>}, {pipeline_mode = #tpu.pipeline_mode<synchronous>, transform_indices = @transform_11, window_bounds = array<i64: 64, 128>}, {pipeline_mode = #tpu.pipeline_mode<synchronous>, transform_indices = @transform_12, window_bounds = array<i64: 1, 128>}, {pipeline_mode = #tpu.pipeline_mode<synchronous>, transform_indices = @transform_13, window_bounds = array<i64: 128, 256>}, {pipeline_mode = #tpu.pipeline_mode<synchronous>, transform_indices = @transform_14, window_bounds = array<i64: 1, 256>}, {pipeline_mode = #tpu.pipeline_mode<synchronous>, transform_indices = @transform_15, window_bounds = array<i64: 256, 128>}, {pipeline_mode = #tpu.pipeline_mode<synchronous>, transform_indices = @transform_16, window_bounds = array<i64: 1, 128>}, {pipeline_mode = #tpu.pipeline_mode<synchronous>, transform_indices = @transform_17, window_bounds = array<i64: 128, 128>}, {pipeline_mode = #tpu.pipeline_mode<synchronous>, transform_indices = @transform_18, window_bounds = array<i64: 1, 128>}, {transform_indices = @transform_19, window_bounds = array<i64: 8, 128>}]} {
    %c0 = arith.constant 0 : index
    %c0_0 = arith.constant 0 : index
    %0 = vector.load %arg1[%c0, %c0_0] : memref<8x32xbf16, #tpu.memory_space<vmem>>, vector<8x32xbf16>
    %c0_1 = arith.constant 0 : index
    %c0_2 = arith.constant 0 : index
    %1 = vector.load %arg2[%c0_1, %c0_2] : memref<32x256xbf16, #tpu.memory_space<vmem>>, vector<32x256xbf16>
    %cst = arith.constant dense<0.000000e+00> : vector<8x256xf32>
    %2 = tpu.matmul %0, %1, %cst {dimension_numbers = #tpu.dot_dimension_numbers<[1], [0], [0], [1], [0, 0, 1, 1], [], []>} : vector<8x32xbf16>, vector<32x256xbf16>, vector<8x256xf32> -> vector<8x256xf32>
    %c0_3 = arith.constant 0 : index
    %c0_4 = arith.constant 0 : index
    %3 = vector.load %arg3[%c0_3, %c0_4] : memref<1x256xf32, #tpu.memory_space<vmem>>, vector<1x256xf32>
    %4 = vector.broadcast %3 : vector<1x256xf32> to vector<8x256xf32>
    %5 = arith.addf %2, %4 : vector<8x256xf32>
    %cst_5 = arith.constant 0.000000e+00 : f32
    %6 = vector.broadcast %cst_5 : f32 to vector<8x256xf32>
    %7 = arith.maximumf %5, %6 : vector<8x256xf32>
    %8 = arith.truncf %7 : vector<8x256xf32> to vector<8x256xbf16>
    %c0_6 = arith.constant 0 : index
    %c0_7 = arith.constant 0 : index
    %9 = vector.load %arg4[%c0_6, %c0_7] : memref<256x128xbf16, #tpu.memory_space<vmem>>, vector<256x128xbf16>
    %cst_8 = arith.constant dense<0.000000e+00> : vector<8x128xf32>
    %10 = tpu.matmul %8, %9, %cst_8 {dimension_numbers = #tpu.dot_dimension_numbers<[1], [0], [0], [1], [0, 0, 1, 1], [], []>} : vector<8x256xbf16>, vector<256x128xbf16>, vector<8x128xf32> -> vector<8x128xf32>
    %c0_9 = arith.constant 0 : index
    %c0_10 = arith.constant 0 : index
    %11 = vector.load %arg5[%c0_9, %c0_10] : memref<1x128xf32, #tpu.memory_space<vmem>>, vector<1x128xf32>
    %12 = vector.broadcast %11 : vector<1x128xf32> to vector<8x128xf32>
    %13 = arith.addf %10, %12 : vector<8x128xf32>
    %cst_11 = arith.constant 0.000000e+00 : f32
    %14 = vector.broadcast %cst_11 : f32 to vector<8x128xf32>
    %15 = arith.maximumf %13, %14 : vector<8x128xf32>
    %16 = arith.truncf %15 : vector<8x128xf32> to vector<8x128xbf16>
    %c0_12 = arith.constant 0 : index
    %c0_13 = arith.constant 0 : index
    %17 = vector.load %arg6[%c0_12, %c0_13] : memref<128x64xbf16, #tpu.memory_space<vmem>>, vector<128x64xbf16>
    %cst_14 = arith.constant dense<0.000000e+00> : vector<8x64xf32>
    %18 = tpu.matmul %16, %17, %cst_14 {dimension_numbers = #tpu.dot_dimension_numbers<[1], [0], [0], [1], [0, 0, 1, 1], [], []>} : vector<8x128xbf16>, vector<128x64xbf16>, vector<8x64xf32> -> vector<8x64xf32>
    %c0_15 = arith.constant 0 : index
    %c0_16 = arith.constant 0 : index
    %19 = vector.load %arg7[%c0_15, %c0_16] : memref<1x64xf32, #tpu.memory_space<vmem>>, vector<1x64xf32>
    %20 = vector.broadcast %19 : vector<1x64xf32> to vector<8x64xf32>
    %21 = arith.addf %18, %20 : vector<8x64xf32>
    %cst_17 = arith.constant 0.000000e+00 : f32
    %22 = vector.broadcast %cst_17 : f32 to vector<8x64xf32>
    %23 = arith.maximumf %21, %22 : vector<8x64xf32>
    %24 = arith.truncf %23 : vector<8x64xf32> to vector<8x64xbf16>
    %c0_18 = arith.constant 0 : index
    %c0_19 = arith.constant 0 : index
    %25 = vector.load %arg8[%c0_18, %c0_19] : memref<64x128xbf16, #tpu.memory_space<vmem>>, vector<64x128xbf16>
    %cst_20 = arith.constant dense<0.000000e+00> : vector<8x128xf32>
    %26 = tpu.matmul %24, %25, %cst_20 {dimension_numbers = #tpu.dot_dimension_numbers<[1], [0], [0], [1], [0, 0, 1, 1], [], []>} : vector<8x64xbf16>, vector<64x128xbf16>, vector<8x128xf32> -> vector<8x128xf32>
    %c0_21 = arith.constant 0 : index
    %c0_22 = arith.constant 0 : index
    %27 = vector.load %arg9[%c0_21, %c0_22] : memref<1x128xf32, #tpu.memory_space<vmem>>, vector<1x128xf32>
    %28 = vector.broadcast %27 : vector<1x128xf32> to vector<8x128xf32>
    %29 = arith.addf %26, %28 : vector<8x128xf32>
    %30 = arith.truncf %29 : vector<8x128xf32> to vector<8x128xbf16>
    %c0_23 = arith.constant 0 : index
    %c0_24 = arith.constant 0 : index
    %31 = vector.load %arg10[%c0_23, %c0_24] : memref<128x64xbf16, #tpu.memory_space<vmem>>, vector<128x64xbf16>
    %cst_25 = arith.constant dense<0.000000e+00> : vector<8x64xf32>
    %32 = tpu.matmul %30, %31, %cst_25 {dimension_numbers = #tpu.dot_dimension_numbers<[1], [0], [0], [1], [0, 0, 1, 1], [], []>} : vector<8x128xbf16>, vector<128x64xbf16>, vector<8x64xf32> -> vector<8x64xf32>
    %c0_26 = arith.constant 0 : index
    %c0_27 = arith.constant 0 : index
    %33 = vector.load %arg11[%c0_26, %c0_27] : memref<1x64xf32, #tpu.memory_space<vmem>>, vector<1x64xf32>
    %34 = vector.broadcast %33 : vector<1x64xf32> to vector<8x64xf32>
    %35 = arith.addf %32, %34 : vector<8x64xf32>
    %cst_28 = arith.constant 0.000000e+00 : f32
    %36 = vector.broadcast %cst_28 : f32 to vector<8x64xf32>
    %37 = arith.maximumf %35, %36 : vector<8x64xf32>
    %38 = arith.truncf %37 : vector<8x64xf32> to vector<8x64xbf16>
    %c0_29 = arith.constant 0 : index
    %c0_30 = arith.constant 0 : index
    %39 = vector.load %arg12[%c0_29, %c0_30] : memref<64x128xbf16, #tpu.memory_space<vmem>>, vector<64x128xbf16>
    %cst_31 = arith.constant dense<0.000000e+00> : vector<8x128xf32>
    %40 = tpu.matmul %38, %39, %cst_31 {dimension_numbers = #tpu.dot_dimension_numbers<[1], [0], [0], [1], [0, 0, 1, 1], [], []>} : vector<8x64xbf16>, vector<64x128xbf16>, vector<8x128xf32> -> vector<8x128xf32>
    %c0_32 = arith.constant 0 : index
    %c0_33 = arith.constant 0 : index
    %41 = vector.load %arg13[%c0_32, %c0_33] : memref<1x128xf32, #tpu.memory_space<vmem>>, vector<1x128xf32>
    %42 = vector.broadcast %41 : vector<1x128xf32> to vector<8x128xf32>
    %43 = arith.addf %40, %42 : vector<8x128xf32>
    %cst_34 = arith.constant 0.000000e+00 : f32
    %44 = vector.broadcast %cst_34 : f32 to vector<8x128xf32>
    %45 = arith.maximumf %43, %44 : vector<8x128xf32>
    %46 = arith.truncf %45 : vector<8x128xf32> to vector<8x128xbf16>
    %c0_35 = arith.constant 0 : index
    %c0_36 = arith.constant 0 : index
    %47 = vector.load %arg14[%c0_35, %c0_36] : memref<128x256xbf16, #tpu.memory_space<vmem>>, vector<128x256xbf16>
    %cst_37 = arith.constant dense<0.000000e+00> : vector<8x256xf32>
    %48 = tpu.matmul %46, %47, %cst_37 {dimension_numbers = #tpu.dot_dimension_numbers<[1], [0], [0], [1], [0, 0, 1, 1], [], []>} : vector<8x128xbf16>, vector<128x256xbf16>, vector<8x256xf32> -> vector<8x256xf32>
    %c0_38 = arith.constant 0 : index
    %c0_39 = arith.constant 0 : index
    %49 = vector.load %arg15[%c0_38, %c0_39] : memref<1x256xf32, #tpu.memory_space<vmem>>, vector<1x256xf32>
    %50 = vector.broadcast %49 : vector<1x256xf32> to vector<8x256xf32>
    %51 = arith.addf %48, %50 : vector<8x256xf32>
    %cst_40 = arith.constant 0.000000e+00 : f32
    %52 = vector.broadcast %cst_40 : f32 to vector<8x256xf32>
    %53 = arith.maximumf %51, %52 : vector<8x256xf32>
    %54 = arith.truncf %53 : vector<8x256xf32> to vector<8x256xbf16>
    %c0_41 = arith.constant 0 : index
    %c0_42 = arith.constant 0 : index
    %55 = vector.load %arg16[%c0_41, %c0_42] : memref<256x128xbf16, #tpu.memory_space<vmem>>, vector<256x128xbf16>
    %cst_43 = arith.constant dense<0.000000e+00> : vector<8x128xf32>
    %56 = tpu.matmul %54, %55, %cst_43 {dimension_numbers = #tpu.dot_dimension_numbers<[1], [0], [0], [1], [0, 0, 1, 1], [], []>} : vector<8x256xbf16>, vector<256x128xbf16>, vector<8x128xf32> -> vector<8x128xf32>
    %c0_44 = arith.constant 0 : index
    %c0_45 = arith.constant 0 : index
    %57 = vector.load %arg17[%c0_44, %c0_45] : memref<1x128xf32, #tpu.memory_space<vmem>>, vector<1x128xf32>
    %58 = vector.broadcast %57 : vector<1x128xf32> to vector<8x128xf32>
    %59 = arith.addf %56, %58 : vector<8x128xf32>
    %c0_46 = arith.constant 0 : index
    %c0_47 = arith.constant 0 : index
    %60 = vector.load %arg18[%c0_46, %c0_47] : memref<128x128xbf16, #tpu.memory_space<vmem>>, vector<128x128xbf16>
    %cst_48 = arith.constant dense<0.000000e+00> : vector<8x128xf32>
    %61 = tpu.matmul %30, %60, %cst_48 {dimension_numbers = #tpu.dot_dimension_numbers<[1], [0], [0], [1], [0, 0, 1, 1], [], []>} : vector<8x128xbf16>, vector<128x128xbf16>, vector<8x128xf32> -> vector<8x128xf32>
    %c0_49 = arith.constant 0 : index
    %c0_50 = arith.constant 0 : index
    %62 = vector.load %arg19[%c0_49, %c0_50] : memref<1x128xf32, #tpu.memory_space<vmem>>, vector<1x128xf32>
    %63 = vector.broadcast %62 : vector<1x128xf32> to vector<8x128xf32>
    %64 = arith.addf %61, %63 : vector<8x128xf32>
    %cst_51 = arith.constant 5.000000e-01 : f32
    %65 = vector.broadcast %cst_51 : f32 to vector<8x128xf32>
    %66 = arith.mulf %65, %64 : vector<8x128xf32>
    %67 = math.tanh %66 : vector<8x128xf32>
    %cst_52 = arith.constant 1.000000e+00 : f32
    %68 = vector.broadcast %cst_52 : f32 to vector<8x128xf32>
    %69 = arith.addf %67, %68 : vector<8x128xf32>
    %cst_53 = arith.constant 5.000000e-01 : f32
    %70 = vector.broadcast %cst_53 : f32 to vector<8x128xf32>
    %71 = arith.mulf %70, %69 : vector<8x128xf32>
    %72 = tpu.iota {dimensions = array<i32: 1>} : vector<8x128xi32>
    %c32_i32 = arith.constant 32 : i32
    %73 = vector.broadcast %c32_i32 : i32 to vector<8x128xi32>
    %74 = arith.cmpi eq, %72, %73 : vector<8x128xi32>
    %75 = arith.select %74, %71, %59 : vector<8x128xi1>, vector<8x128xf32>
    %c0_54 = arith.constant 0 : index
    %c0_55 = arith.constant 0 : index
    %76 = vector.load %arg20[%c0_54, %c0_55] : memref<8x128xf32, #tpu.memory_space<vmem>>, vector<8x128xf32>
    tpu.vector_store %arg20[%c0_54, %c0_55], %75 {strides = array<i32>} : memref<8x128xf32, #tpu.memory_space<vmem>>, vector<8x128xf32>,
    return
  }
  func.func @transform_0(%arg0: i32) -> (i32, i32) {
    %c0_i32 = arith.constant 0 : i32
    %c0_i32_0 = arith.constant 0 : i32
    return %arg0, %c0_i32 : i32, i32
  }
  func.func @transform_1(%arg0: i32) -> (i32, i32) {
    %c0_i32 = arith.constant 0 : i32
    %c0_i32_0 = arith.constant 0 : i32
    %c0_i32_1 = arith.constant 0 : i32
    return %c0_i32, %c0_i32_0 : i32, i32
  }
  func.func @transform_2(%arg0: i32) -> (i32, i32) {
    %c0_i32 = arith.constant 0 : i32
    %c0_i32_0 = arith.constant 0 : i32
    %c0_i32_1 = arith.constant 0 : i32
    return %c0_i32, %c0_i32_0 : i32, i32
  }
  func.func @transform_3(%arg0: i32) -> (i32, i32) {
    %c0_i32 = arith.constant 0 : i32
    %c0_i32_0 = arith.constant 0 : i32
    %c0_i32_1 = arith.constant 0 : i32
    return %c0_i32, %c0_i32_0 : i32, i32
  }
  func.func @transform_4(%arg0: i32) -> (i32, i32) {
    %c0_i32 = arith.constant 0 : i32
    %c0_i32_0 = arith.constant 0 : i32
    %c0_i32_1 = arith.constant 0 : i32
    return %c0_i32, %c0_i32_0 : i32, i32
  }
  func.func @transform_5(%arg0: i32) -> (i32, i32) {
    %c0_i32 = arith.constant 0 : i32
    %c0_i32_0 = arith.constant 0 : i32
    %c0_i32_1 = arith.constant 0 : i32
    return %c0_i32, %c0_i32_0 : i32, i32
  }
  func.func @transform_6(%arg0: i32) -> (i32, i32) {
    %c0_i32 = arith.constant 0 : i32
    %c0_i32_0 = arith.constant 0 : i32
    %c0_i32_1 = arith.constant 0 : i32
    return %c0_i32, %c0_i32_0 : i32, i32
  }
  func.func @transform_7(%arg0: i32) -> (i32, i32) {
    %c0_i32 = arith.constant 0 : i32
    %c0_i32_0 = arith.constant 0 : i32
    %c0_i32_1 = arith.constant 0 : i32
    return %c0_i32, %c0_i32_0 : i32, i32
  }
  func.func @transform_8(%arg0: i32) -> (i32, i32) {
    %c0_i32 = arith.constant 0 : i32
    %c0_i32_0 = arith.constant 0 : i32
    %c0_i32_1 = arith.constant 0 : i32
    return %c0_i32, %c0_i32_0 : i32, i32
  }
  func.func @transform_9(%arg0: i32) -> (i32, i32) {
    %c0_i32 = arith.constant 0 : i32
    %c0_i32_0 = arith.constant 0 : i32
    %c0_i32_1 = arith.constant 0 : i32
    return %c0_i32, %c0_i32_0 : i32, i32
  }
  func.func @transform_10(%arg0: i32) -> (i32, i32) {
    %c0_i32 = arith.constant 0 : i32
    %c0_i32_0 = arith.constant 0 : i32
    %c0_i32_1 = arith.constant 0 : i32
    return %c0_i32, %c0_i32_0 : i32, i32
  }
  func.func @transform_11(%arg0: i32) -> (i32, i32) {
    %c0_i32 = arith.constant 0 : i32
    %c0_i32_0 = arith.constant 0 : i32
    %c0_i32_1 = arith.constant 0 : i32
    return %c0_i32, %c0_i32_0 : i32, i32
  }
  func.func @transform_12(%arg0: i32) -> (i32, i32) {
    %c0_i32 = arith.constant 0 : i32
    %c0_i32_0 = arith.constant 0 : i32
    %c0_i32_1 = arith.constant 0 : i32
    return %c0_i32, %c0_i32_0 : i32, i32
  }
  func.func @transform_13(%arg0: i32) -> (i32, i32) {
    %c0_i32 = arith.constant 0 : i32
    %c0_i32_0 = arith.constant 0 : i32
    %c0_i32_1 = arith.constant 0 : i32
    return %c0_i32, %c0_i32_0 : i32, i32
  }
  func.func @transform_14(%arg0: i32) -> (i32, i32) {
    %c0_i32 = arith.constant 0 : i32
    %c0_i32_0 = arith.constant 0 : i32
    %c0_i32_1 = arith.constant 0 : i32
    return %c0_i32, %c0_i32_0 : i32, i32
  }
  func.func @transform_15(%arg0: i32) -> (i32, i32) {
    %c0_i32 = arith.constant 0 : i32
    %c0_i32_0 = arith.constant 0 : i32
    %c0_i32_1 = arith.constant 0 : i32
    return %c0_i32, %c0_i32_0 : i32, i32
  }
  func.func @transform_16(%arg0: i32) -> (i32, i32) {
    %c0_i32 = arith.constant 0 : i32
    %c0_i32_0 = arith.constant 0 : i32
    %c0_i32_1 = arith.constant 0 : i32
    return %c0_i32, %c0_i32_0 : i32, i32
  }
  func.func @transform_17(%arg0: i32) -> (i32, i32) {
    %c0_i32 = arith.constant 0 : i32
    %c0_i32_0 = arith.constant 0 : i32
    %c0_i32_1 = arith.constant 0 : i32
    return %c0_i32, %c0_i32_0 : i32, i32
  }
  func.func @transform_18(%arg0: i32) -> (i32, i32) {
    %c0_i32 = arith.constant 0 : i32
    %c0_i32_0 = arith.constant 0 : i32
    %c0_i32_1 = arith.constant 0 : i32
    return %c0_i32, %c0_i32_0 : i32, i32
  }
  func.func @transform_19(%arg0: i32) -> (i32, i32) {
    %c0_i32 = arith.constant 0 : i32
    %c0_i32_0 = arith.constant 0 : i32
    return %arg0, %c0_i32 : i32, i32
  }
}

</mosaic_0001>

<bundles_post_ra>
// kernel: tpu_custom_call.1
= control target key start
LH: loop header
LB: loop body
LE: loop exit
PB: predicated region body
PF: predicated region fallthrough
CT: control target
= control target key end

     0   :  { %s2360_s0 = inlined_call_operand.hbm [shape: bf16[8,32], index: 0, kind: input, shape index: {}]   ;;  %s2361_s1 = inlined_call_operand.hbm [shape: bf16[32,256], index: 1, kind: input, shape index: {}]   ;;  %s2362_s2 = inlined_call_operand.vmem [shape: f32[1,256], index: 2, kind: input, shape index: {}]   ;;  %s2363_s3 = inlined_call_operand.vmem [shape: bf16[256,128], index: 3, kind: input, shape index: {}]   ;;  %s2364_s4 = inlined_call_operand.hbm [shape: f32[1,128], index: 4, kind: input, shape index: {}]   ;;  %s2365_s5 = inlined_call_operand.vmem [shape: bf16[128,64], index: 5, kind: input, shape index: {}]   ;;  %s2366_s6 = inlined_call_operand.hbm [shape: f32[1,64], index: 6, kind: input, shape index: {}]   ;;  %s2367_s7 = inlined_call_operand.hbm [shape: bf16[64,128], index: 7, kind: input, shape index: {}]   ;;  %s2368_s8 = inlined_call_operand.hbm [shape: f32[1,128], index: 8, kind: input, shape index: {}]   ;;  %s2369_s9 = inlined_call_operand.vmem [shape: bf16[128,64], index: 9, kind: input, shape index: {}]   ;;  %s2370_s10 = inlined_call_operand.vmem [shape: f32[1,64], index: 10, kind: input, shape index: {}]   ;;  %s2371_s11 = inlined_call_operand.hbm [shape: bf16[64,128], index: 11, kind: input, shape index: {}]   ;;  %s2372_s12 = inlined_call_operand.vmem [shape: f32[1,128], index: 12, kind: input, shape index: {}]   ;;  %s2373_s13 = inlined_call_operand.hbm [shape: bf16[128,256], index: 13, kind: input, shape index: {}]   ;;  %s2374_s14 = inlined_call_operand.vmem [shape: f32[1,256], index: 14, kind: input, shape index: {}]   ;;  %s2375_s15 = inlined_call_operand.hbm [shape: bf16[256,128], index: 15, kind: input, shape index: {}]   ;;  %s2376_s16 = inlined_call_operand.vmem [shape: f32[1,128], index: 16, kind: input, shape index: {}]   ;;  %s2377_s17 = inlined_call_operand.vmem [shape: bf16[128,128], index: 17, kind: input, shape index: {}]   ;;  %s2378_s18 = inlined_call_operand.vmem [shape: f32[1,128], index: 18, kind: input, shape index: {}]   ;;  %s2379_s19 = inlined_call_operand.hbm [shape: f32[8,128], index: 19, kind: output, shape index: {}]  }
   0x1   :  { %2384 = sst [smem:[#allocation24_spill]] %s2360_s0 }
   0x2   :  { %2385 = sst [smem:[#allocation25_spill]] %s2361_s1 }
   0x3   :  { %2386 = sst [smem:[#allocation26_spill]] %s2362_s2 }
   0x4   :  { %2387 = sst [smem:[#allocation27_spill]] %s2363_s3 }
   0x5   :  { %2388 = sst [smem:[#allocation28_spill]] %s2376_s16 }
   0x6   :  { %2389 = sst [smem:[#allocation29_spill]] %s2379_s19 }
   0x7   :  { %24 = vsyncpa [#allocation3], 0 }
   0x8   :  { %25 = vsyncpa [#allocation6], 0 }
   0x9   :  { %26 = vsyncpa [#allocation9], 0 }
   0xa   :  { %27 = vsyncpa [#allocation12], 0 }
   0xb   :  { %28 = vsyncpa [#allocation15], 0 }
   0xc   :  { %29 = vsyncpa [#allocation4], 0  ;;  %s1906_s0 = smov [#allocation5]   ;;  %s2390_s1 = sld [smem:[#allocation25_spill]] }
   0xd   :  { %s45_s30 = sshll.u32 %s1906_s0, 4  ;;  %s46_s30 = int_to_ptr.vmem [resolvable:$true] %s45_s30 }
  0x12   :  { %s1674_s22 = scalar_lea.hbm %s2390_s1, 512 }
  0x13   :  { %p1675_p0 = scmp.ne.s32.totalorder %s2390_s1, %s1674_s22  ;;  %p1678_p1 = scmp.lt.u32.totalorder %s1674_s22, %s2390_s1 }
  0x15   :  { %p1680_p2 = pnand %p1678_p1, %p1675_p0 }
  0x17   :  { %1683 = shalt.err (!%p1680_p2)
}
  0x18   :  { %s1684_s3 = scalar_lea.vmem %s46_s30, 512  ;;  %p1689_p4 = scmp.lt.s32.totalorder %s46_s30, %s46_s30 }
  0x19   :  { %p1685_p3 = scmp.ne.s32.totalorder %s46_s30, %s1684_s3  ;;  %p1690_p5 = scmp.lt.s32.totalorder %s1684_s3, %s1684_s3 }
  0x1b   :  { %p1691_p6 = por %p1690_p5, %p1689_p4 }
  0x1d   :  { %p1692_p7 = pnand %p1691_p6, %p1685_p3 }
  0x1f   :  { %1695 = shalt.err (!%p1692_p7)
}
  0x20   :  { %s1907_s26 = smov 128   ;;  %s1908_s27 = smov 8  }
  0x21   :  { %51 = dma.hbm_to_vmem [thread:$0]  %s2390_s1, 512, %s46_s30, [#allocation6], %s1907_s26, %s1907_s26, %s1908_s27  }
  0x22   :  { %s1909_s0 = smov [#allocation8]   ;;  %s1910_s21 = smov [#allocation11]  }
  0x23   :  { %s74_s20 = sshll.u32 %s1909_s0, 4  ;;  %s96_s22 = sshll.u32 %s1910_s21, 4  ;;  %s75_s20 = int_to_ptr.vmem [resolvable:$true] %s74_s20  ;;  %s97_s22 = int_to_ptr.vmem [resolvable:$true] %s96_s22 }
  0x24   :  { %s1696_s24 = scalar_lea.hbm %s2366_s6, 16 }
  0x25   :  { %p1697_p8 = scmp.ne.s32.totalorder %s2366_s6, %s1696_s24  ;;  %p1700_p9 = scmp.lt.u32.totalorder %s1696_s24, %s2366_s6 }
  0x27   :  { %p1702_p10 = pnand %p1700_p9, %p1697_p8 }
  0x29   :  { %1705 = shalt.err (!%p1702_p10)
}
  0x2a   :  { %s1706_s30 = scalar_lea.vmem %s75_s20, 16  ;;  %s1710_s1 = scalar_lea.vmem %s75_s20, 32 }
  0x2b   :  { %p1707_p11 = scmp.ne.s32.totalorder %s75_s20, %s1706_s30  ;;  %p1711_p12 = scmp.lt.s32.totalorder %s75_s20, %s75_s20 }
  0x2c   :  { %p1712_p13 = scmp.lt.s32.totalorder %s1710_s1, %s1706_s30 }
  0x2e   :  { %p1713_p0 = por %p1712_p13, %p1711_p12 }
  0x30   :  { %p1714_p1 = pnand %p1713_p0, %p1707_p11 }
  0x32   :  { %1717 = shalt.err (!%p1714_p1)
}
  0x33   :  { %77 = dma.hbm_to_vmem [thread:$0]  %s2366_s6, 16, %s75_s20, [#allocation9]  }
  0x34   :  { %s1718_s16 = scalar_lea.hbm %s2368_s8, 16 }
  0x35   :  { %p1719_p2 = scmp.ne.s32.totalorder %s2368_s8, %s1718_s16  ;;  %p1722_p3 = scmp.lt.u32.totalorder %s1718_s16, %s2368_s8 }
  0x37   :  { %p1724_p4 = pnand %p1722_p3, %p1719_p2 }
  0x39   :  { %1727 = shalt.err (!%p1724_p4)
}
  0x3a   :  { %s1728_s25 = scalar_lea.vmem %s97_s22, 16  ;;  %s1732_s3 = scalar_lea.vmem %s97_s22, 32 }
  0x3b   :  { %p1729_p5 = scmp.ne.s32.totalorder %s97_s22, %s1728_s25  ;;  %p1733_p6 = scmp.lt.s32.totalorder %s97_s22, %s97_s22 }
  0x3c   :  { %p1734_p7 = scmp.lt.s32.totalorder %s1732_s3, %s1728_s25 }
  0x3e   :  { %p1735_p8 = por %p1734_p7, %p1733_p6 }
  0x40   :  { %p1736_p9 = pnand %p1735_p8, %p1729_p5 }
  0x42   :  { %1739 = shalt.err (!%p1736_p9)
}
  0x43   :  { %99 = dma.hbm_to_vmem [thread:$0]  %s2368_s8, 16, %s97_s22, [#allocation12]  }
  0x44   :  { %s1911_s30 = smov [#allocation14]   ;;  %s1912_s28 = smov [#allocation2]  }
  0x45   :  { %s123_s1 = sshll.u32 %s1911_s30, 4  ;;  %s36_s29 = sshll.u32 %s1912_s28, 4  ;;  %s124_s1 = int_to_ptr.vmem [resolvable:$true] %s123_s1  ;;  %s37_s29 = int_to_ptr.vmem [resolvable:$true] %s36_s29 }
  0x46   :  { %s1740_s16 = scalar_lea.hbm %s2373_s13, 2048 }
  0x47   :  { %p1741_p10 = scmp.ne.s32.totalorder %s2373_s13, %s1740_s16  ;;  %p1744_p11 = scmp.lt.u32.totalorder %s1740_s16, %s2373_s13 }
  0x49   :  { %p1746_p12 = pnand %p1744_p11, %p1741_p10 }
  0x4b   :  { %1749 = shalt.err (!%p1746_p12)
}
  0x4c   :  { %s1750_s8 = scalar_lea.vmem %s124_s1, 2048  ;;  %p1755_p0 = scmp.lt.s32.totalorder %s124_s1, %s124_s1 }
  0x4d   :  { %p1751_p13 = scmp.ne.s32.totalorder %s124_s1, %s1750_s8  ;;  %p1756_p1 = scmp.lt.s32.totalorder %s1750_s8, %s1750_s8 }
  0x4f   :  { %p1757_p2 = por %p1756_p1, %p1755_p0 }
  0x51   :  { %p1758_p3 = pnand %p1757_p2, %p1751_p13 }
  0x53   :  { %1761 = shalt.err (!%p1758_p3)
}
  0x54   :  { %129 = dma.hbm_to_vmem [thread:$0]  %s2373_s13, 2048, %s124_s1, [#allocation15], %s1907_s26, %s1907_s26, %s1908_s27  }
  0x55   :  { %s2391_s20 = sld [smem:[#allocation24_spill]] }
  0x5b   :  { %s1762_s30 = scalar_lea.hbm %s2391_s20, 64 }
  0x5c   :  { %p1763_p4 = scmp.ne.s32.totalorder %s2391_s20, %s1762_s30  ;;  %p1766_p5 = scmp.lt.u32.totalorder %s1762_s30, %s2391_s20 }
  0x5e   :  { %p1768_p6 = pnand %p1766_p5, %p1763_p4 }
  0x60   :  { %1771 = shalt.err (!%p1768_p6)
}
  0x61   :  { %s1772_s19 = scalar_lea.vmem %s37_s29, 64  ;;  %p1777_p8 = scmp.lt.s32.totalorder %s37_s29, %s37_s29 }
  0x62   :  { %p1773_p7 = scmp.ne.s32.totalorder %s37_s29, %s1772_s19  ;;  %p1778_p9 = scmp.lt.s32.totalorder %s1772_s19, %s1772_s19 }
  0x64   :  { %p1779_p10 = por %p1778_p9, %p1777_p8 }
  0x66   :  { %p1780_p11 = pnand %p1779_p10, %p1773_p7 }
  0x68   :  { %1783 = shalt.err (!%p1780_p11)
}
  0x69   :  { %39 = dma.hbm_to_vmem [thread:$0]  %s2391_s20, 64, %s37_s29, [#allocation3]  }
  0x6a   :  { %s1913_s27 = smov [#allocation7]   ;;  %s1914_s2 = smov [#allocation10]  }
  0x6b   :  { %s62_s1 = sshll.u32 %s1913_s27, 4  ;;  %s83_s23 = sshll.u32 %s1914_s2, 4  ;;  %s63_s1 = int_to_ptr.vmem [resolvable:$true] %s62_s1  ;;  %s84_s23 = int_to_ptr.vmem [resolvable:$true] %s83_s23 }
  0x6c   :  { %s1784_s22 = scalar_lea.hbm %s2364_s4, 16 }
  0x6d   :  { %p1785_p12 = scmp.ne.s32.totalorder %s2364_s4, %s1784_s22  ;;  %p1788_p13 = scmp.lt.u32.totalorder %s1784_s22, %s2364_s4 }
  0x6f   :  { %p1790_p0 = pnand %p1788_p13, %p1785_p12 }
  0x71   :  { %1793 = shalt.err (!%p1790_p0)
}
  0x72   :  { %s1794_s29 = scalar_lea.vmem %s63_s1, 16  ;;  %s1798_s20 = scalar_lea.vmem %s63_s1, 32 }
  0x73   :  { %p1795_p1 = scmp.ne.s32.totalorder %s63_s1, %s1794_s29  ;;  %p1799_p2 = scmp.lt.s32.totalorder %s63_s1, %s63_s1 }
  0x74   :  { %p1800_p3 = scmp.lt.s32.totalorder %s1798_s20, %s1794_s29 }
  0x76   :  { %p1801_p4 = por %p1800_p3, %p1799_p2 }
  0x78   :  { %p1802_p5 = pnand %p1801_p4, %p1795_p1 }
  0x7a   :  { %1805 = shalt.err (!%p1802_p5)
}
  0x7b   :  { %65 = dma.hbm_to_vmem [thread:$0]  %s2364_s4, 16, %s63_s1, [#allocation6]  }
  0x7c   :  { %s1806_s19 = scalar_lea.hbm %s2367_s7, 512 }
  0x7d   :  { %p1807_p6 = scmp.ne.s32.totalorder %s2367_s7, %s1806_s19  ;;  %p1810_p7 = scmp.lt.u32.totalorder %s1806_s19, %s2367_s7 }
  0x7f   :  { %p1812_p8 = pnand %p1810_p7, %p1807_p6 }
  0x81   :  { %1815 = shalt.err (!%p1812_p8)
}
  0x82   :  { %s1816_s24 = scalar_lea.vmem %s84_s23, 512  ;;  %p1821_p10 = scmp.lt.s32.totalorder %s84_s23, %s84_s23 }
  0x83   :  { %p1817_p9 = scmp.ne.s32.totalorder %s84_s23, %s1816_s24  ;;  %p1822_p11 = scmp.lt.s32.totalorder %s1816_s24, %s1816_s24 }
  0x85   :  { %p1823_p12 = por %p1822_p11, %p1821_p10 }
  0x87   :  { %p1824_p13 = pnand %p1823_p12, %p1817_p9 }
  0x89   :  { %1827 = shalt.err (!%p1824_p13)
}
  0x8a   :  { %s1915_s4 = smov 64   ;;  %s1916_s1 = smov 4  }
  0x8b   :  { %89 = dma.hbm_to_vmem [thread:$0]  %s2367_s7, 512, %s84_s23, [#allocation9], %s1915_s4, %s1915_s4, %s1916_s1  }
  0x8c   :  { %s1917_s25 = smov [#allocation13]   ;;  %s1918_s6 = smov [#allocation16]  }
  0x8d   :  { %s109_s3 = sshll.u32 %s1917_s25, 4  ;;  %s137_s30 = sshll.u32 %s1918_s6, 4  ;;  %s110_s3 = int_to_ptr.vmem [resolvable:$true] %s109_s3  ;;  %s138_s30 = int_to_ptr.vmem [resolvable:$true] %s137_s30 }
  0x8e   :  { %s1828_s28 = scalar_lea.hbm %s2371_s11, 512 }
  0x8f   :  { %p1829_p0 = scmp.ne.s32.totalorder %s2371_s11, %s1828_s28  ;;  %p1832_p1 = scmp.lt.u32.totalorder %s1828_s28, %s2371_s11 }
  0x91   :  { %p1834_p2 = pnand %p1832_p1, %p1829_p0 }
  0x93   :  { %1837 = shalt.err (!%p1834_p2)
}
  0x94   :  { %s1838_s7 = scalar_lea.vmem %s110_s3, 512  ;;  %p1843_p4 = scmp.lt.s32.totalorder %s110_s3, %s110_s3 }
  0x95   :  { %p1839_p3 = scmp.ne.s32.totalorder %s110_s3, %s1838_s7  ;;  %p1844_p5 = scmp.lt.s32.totalorder %s1838_s7, %s1838_s7 }
  0x97   :  { %p1845_p6 = por %p1844_p5, %p1843_p4 }
  0x99   :  { %p1846_p7 = pnand %p1845_p6, %p1839_p3 }
  0x9b   :  { %1849 = shalt.err (!%p1846_p7)
}
  0x9c   :  { %115 = dma.hbm_to_vmem [thread:$0]  %s2371_s11, 512, %s110_s3, [#allocation12], %s1915_s4, %s1915_s4, %s1916_s1  }
  0x9d   :  { %s1850_s2 = scalar_lea.hbm %s2375_s15, 2048 }
  0x9e   :  { %p1851_p8 = scmp.ne.s32.totalorder %s2375_s15, %s1850_s2  ;;  %p1854_p9 = scmp.lt.u32.totalorder %s1850_s2, %s2375_s15 }
  0xa0   :  { %p1856_p10 = pnand %p1854_p9, %p1851_p8 }
  0xa2   :  { %1859 = shalt.err (!%p1856_p10)
}
  0xa3   :  { %s1860_s6 = scalar_lea.vmem %s138_s30, 2048  ;;  %p1865_p12 = scmp.lt.s32.totalorder %s138_s30, %s138_s30 }
  0xa4   :  { %p1861_p11 = scmp.ne.s32.totalorder %s138_s30, %s1860_s6  ;;  %p1866_p13 = scmp.lt.s32.totalorder %s1860_s6, %s1860_s6 }
  0xa6   :  { %p1867_p0 = por %p1866_p13, %p1865_p12 }
  0xa8   :  { %p1868_p1 = pnand %p1867_p0, %p1861_p11 }
  0xaa   :  { %1871 = shalt.err (!%p1868_p1)
}
  0xab   :  { %143 = dma.hbm_to_vmem [thread:$0]  %s2375_s15, 2048, %s138_s30, [#allocation15], %s1915_s4, %s1915_s4, %s1916_s1  }
  0xac   :  { %1894 = dma.done.wait [#allocation3], 64  }
  0xad   :  { %1895 = vsyncadd [#allocation3], 4294967232 }
  0xae   :  { %1896 = dma.done.wait [#allocation6], 528  }
  0xaf   :  { %1897 = vsyncadd [#allocation6], 4294966768 }
  0xb0   :  { %1898 = dma.done.wait [#allocation9], 528  }
  0xb1   :  { %1899 = vsyncadd [#allocation9], 4294966768 }
  0xb2   :  { %1900 = dma.done.wait [#allocation12], 528  }
  0xb3   :  { %1901 = vsyncadd [#allocation12], 4294966768 }
  0xb4   :  { %1902 = dma.done.wait [#allocation15], 4096  }
  0xb5   :  { %1903 = vsyncadd [#allocation15], 4294963200  ;;  %v1919_v0 = vmov 0   ;;  %v1578_v1 = vld [vmem:[#allocation5 + $0x4] ss:$8 sps:$4 sm:$0xff]   ;;  %s2392_s1 = sld [smem:[#allocation27_spill]]  ;;  %v185_v29 = vlaneseq }
  0xb6   :  { %251 = vmatprep.mubr.bf16.mxu0 %v1919_v0  ;;  %v1580_v2 = vld [vmem:[#allocation5] ss:$8 sps:$4 sm:$0xff]   ;;  %219 = vmatprep.subr.bf16.mxu0 %v1578_v1  ;;  %v1581_v3 = vld [vmem:[#allocation5 + $0x14] ss:$8 sps:$4 sm:$0xff]   ;;  %v1583_v4 = vld [vmem:[#allocation5 + $0x10] ss:$8 sps:$4 sm:$0xff]  }
  0xb7   :  { %220 = vmatpush1.bf16.msra.mxu0 %v1580_v2  ;;  %v178_v7 = vld [vmem:[#allocation2] sm:$0xf]  ;;  %vm215_vm0 = vcmask 261120   ;;  %v1920_v23 = vmov 0.0   ;;  %v1601_v24 = vld [vmem:[%s2365_s5 + $0x8] sm:$0xff]   ;;  %v1602_v25 = vld [vmem:[%s2365_s5 + $0x10] sm:$0xff]  }
  0xb8   :  { %221 = vmatprep.subr.bf16.mxu0 %v1581_v3  ;;  %v1600_v22 = vld [vmem:[%s2365_s5] sm:$0xff]   ;;  %v1603_v26 = vld [vmem:[%s2365_s5 + $0x18] sm:$0xff]   ;;  %v1605_v28 = vld [vmem:[%s2365_s5 + $0x28] sm:$0xff]   ;;  %v2222_v30 = vshrl.u32 %v185_v29, 7  ;;  %s2393_s3 = sld [smem:[#allocation26_spill]]  ;;  %vm1921_vm1 = vmmov 0  }
  0xb9   :  { %v1604_v27 = vld [vmem:[%s2365_s5 + $0x20] sm:$0xff]   ;;  %v1606_v46 = vld [vmem:[%s2365_s5 + $0x30] sm:$0xff]   ;;  %v1607_v47 = vld [vmem:[%s2365_s5 + $0x38] sm:$0xff]   ;;  %vm593_vm2 = vcmask 523264   ;;  %s2394_s27 = sld [smem:[#allocation28_spill]]  ;;  %s1922_s2 = smov [#allocation17]  }
  0xba   :  { %v187_v31 = vsub.s32 0, %v2222_v30  ;;  %v191_v33 = vsub.s32 1, %v2222_v30  ;;  %v1307_v49 = vld [vmem:[#allocation7] ss:$0 sm:$0xff]  ;;  %v1608_v56 = vld [vmem:[#allocation10] sm:$0xff]   ;;  %v1609_v58 = vld [vmem:[#allocation10 + $0x8] sm:$0xff]  }
  0xbb   :  { %v1584_v5 = vld [vmem:[%s2392_s1 + $0x40] sm:$0xff]   ;;  %v1586_v8 = vld [vmem:[%s2392_s1 + $0x48] sm:$0xff]   ;;  %222 = vmatpush1.bf16.msra.mxu0 %v1583_v4  ;;  %v1588_v10 = vld [vmem:[%s2392_s1 + $0x50] sm:$0xff]   ;;  %s1289_s24 = sshll.u32 %s1922_s2, 4  ;;  %s1290_s24 = int_to_ptr.vmem [resolvable:$true] %s1289_s24 }
  0xbc   :  { %v1585_v6 = vld [vmem:[%s2392_s1] sm:$0xff]   ;;  %1396 = vmatprep.subr.bf16.mxu1 %v1584_v5  ;;  %v1587_v9 = vld [vmem:[%s2392_s1 + $0x8] sm:$0xff]   ;;  %v1589_v11 = vld [vmem:[%s2392_s1 + $0x10] sm:$0xff]   ;;  %1477 = vmatprep.subr.bf16.mxu0 %v1920_v23  ;;  %p1877_p3 = scmp.lt.s32.totalorder %s1290_s24, %s1290_s24 }
  0xbd   :  { %1397 = vmatpush3.bf16.msra.mxu1 %v1585_v6  ;;  %v1590_v12 = vld [vmem:[%s2392_s1 + $0x58] sm:$0xff]   ;;  %v1592_v14 = vld [vmem:[%s2392_s1 + $0x60] sm:$0xff]   ;;  %v1594_v16 = vld [vmem:[%s2392_s1 + $0x68] sm:$0xff]  }
  0xbe   :  { %1398 = vmatprep.subr.bf16.mxu1 %v1586_v8  ;;  %1306 = vmatmul.mubr.msk.bf16.vlgmr.msra.gmra.mrb[0].mxu0 %vm215_vm0, %v178_v7  ;;  %v1591_v13 = vld [vmem:[%s2392_s1 + $0x18] sm:$0xff]   ;;  %v1593_v15 = vld [vmem:[%s2392_s1 + $0x20] sm:$0xff]   ;;  %v1595_v17 = vld [vmem:[%s2392_s1 + $0x28] sm:$0xff]  }
  0xbf   :  { %v1596_v18 = vld [vmem:[%s2392_s1 + $0x70] sm:$0xff]   ;;  %v1598_v20 = vld [vmem:[%s2392_s1 + $0x78] sm:$0xff]   ;;  %1478 = vmatpush3.bf16.msra.mxu0 %v1600_v22  ;;  %v183_v32 = vld [vmem:[%s2393_s3] sm:$0x3]  ;;  %1493 = vmatprep.mubr.msk.bf16.mxu0 %vm1921_vm1, %v1920_v23 }
  0xc0   :  { %v1597_v19 = vld [vmem:[%s2392_s1 + $0x30] sm:$0xff]   ;;  %v1599_v21 = vld [vmem:[%s2392_s1 + $0x38] sm:$0xff]   ;;  %1479 = vmatprep.subr.bf16.mxu0 %v1920_v23  ;;  %v188_v34 = vrot.slane %v183_v32, %v187_v31  ;;  %v192_v35 = vrot.slane %v183_v32, %v191_v33  ;;  %v1611_v60 = vld [vmem:[#allocation10 + $0x18] sm:$0xff]  }
  0xc1   :  { %1399 = vmatpush3.bf16.msra.mxu1 %v1587_v9  ;;  %v1610_v59 = vld [vmem:[#allocation10 + $0x10] sm:$0xff]   ;;  %v1324_v61 = vld [vmem:[#allocation8] ss:$0 sm:$0xff]  ;;  %v1613_v7 = vld [vmem:[%s2369_s9 + $0x8] sm:$0xff]  }
  0xc2   :  { %1400 = vmatprep.subr.bf16.mxu1 %v1588_v10  ;;  %v1612_v5 = vld [vmem:[%s2369_s9] sm:$0xff]   ;;  %v1614_v8 = vld [vmem:[%s2369_s9 + $0x10] sm:$0xff]   ;;  %v1615_v9 = vld [vmem:[%s2369_s9 + $0x18] sm:$0xff]  }
  0xc3   :  { %1480 = vmatpush3.bf16.msra.mxu0 %v1601_v24  ;;  %v1616_v10 = vld [vmem:[%s2369_s9 + $0x20] sm:$0xff]  }
  0xc4   :  { %1481 = vmatprep.subr.bf16.mxu0 %v1920_v23  ;;  %v1622_v24 = vld [vmem:[#allocation13 + $0x10] sm:$0xff]  }
  0xc5   :  { %1401 = vmatpush3.bf16.msra.mxu1 %v1589_v11  ;;  %v1617_v11 = vld [vmem:[%s2369_s9 + $0x28] sm:$0xff]   ;;  %v1387_v30 = vld [vmem:[%s2378_s18] ss:$0 sm:$0xff]  ;;  %s1872_s18 = scalar_lea.vmem %s1290_s24, 128 }
  0xc6   :  { %1402 = vmatprep.subr.bf16.mxu1 %v1590_v12  ;;  %v1618_v12 = vld [vmem:[%s2369_s9 + $0x30] sm:$0xff]   ;;  %p1873_p2 = scmp.ne.s32.totalorder %s1290_s24, %s1872_s18  ;;  %p1878_p4 = scmp.lt.s32.totalorder %s1872_s18, %s1872_s18 }
  0xc7   :  { %1482 = vmatpush3.bf16.msra.mxu0 %v1602_v25  ;;  %v1623_v25 = vld [vmem:[#allocation13 + $0x18] sm:$0xff]  }
  0xc8   :  { %1483 = vmatprep.subr.bf16.mxu0 %v1920_v23  ;;  %p1879_p5 = por %p1878_p4, %p1877_p3 }
  0xc9   :  { %1403 = vmatpush3.bf16.msra.mxu1 %v1591_v13  ;;  %v1619_v13 = vld [vmem:[%s2369_s9 + $0x38] sm:$0xff]  }
  0xca   :  { %1404 = vmatprep.subr.bf16.mxu1 %v1592_v14  ;;  %v1620_v14 = vld [vmem:[#allocation13] sm:$0xff]   ;;  %p1880_p6 = pnand %p1879_p5, %p1873_p2 }
  0xcb   :  { %1484 = vmatpush3.bf16.msra.mxu0 %v1603_v26  ;;  %v1626_v26 = vld [vmem:[#allocation14 + $0x4] ss:$8 sps:$4 sm:$0xff]  }
  0xcc   :  { %1485 = vmatprep.subr.bf16.mxu0 %v1920_v23 }
  0xcd   :  { %1405 = vmatpush3.bf16.msra.mxu1 %v1593_v15  ;;  %v1621_v15 = vld [vmem:[#allocation13 + $0x8] sm:$0xff]  }
  0xce   :  { %1406 = vmatprep.subr.bf16.mxu1 %v1594_v16  ;;  %v1333_v16 = vld [vmem:[#allocation11] ss:$0 sm:$0xff] }
  0xcf   :  { %1486 = vmatpush3.bf16.msra.mxu0 %v1604_v27  ;;  %v1339_v27 = vld [vmem:[%s2370_s10] ss:$0 sm:$0xff] }
  0xd0   :  { %1487 = vmatprep.subr.bf16.mxu0 %v1920_v23 }
  0xd1   :  { %1407 = vmatpush3.bf16.msra.mxu1 %v1595_v17 }
  0xd2   :  { %1408 = vmatprep.subr.bf16.mxu1 %v1596_v18 }
  0xd3   :  { %1488 = vmatpush3.bf16.msra.mxu0 %v1605_v28 }
  0xd4   :  { %1489 = vmatprep.subr.bf16.mxu0 %v1920_v23 }
  0xd5   :  { %1409 = vmatpush3.bf16.msra.mxu1 %v1597_v19 }
  0xd6   :  { %1410 = vmatprep.subr.bf16.mxu1 %v1598_v20 }
  0xd7   :  { %1490 = vmatpush3.bf16.msra.mxu0 %v1606_v46  ;;  %v1638_v46 = vld [vmem:[#allocation14 + $0x44] ss:$8 sps:$4 sm:$0xff]  }
  0xd8   :  { %1491 = vmatprep.subr.bf16.mxu0 %v1920_v23 }
  0xd9   :  { %1411 = vmatpush3.bf16.msra.mxu1 %v1599_v21 }
  0xda   :  { %1529 = vmatprep.subr.bf16.mxu1 %v1920_v23 }
  0xdb   :  { %1492 = vmatpush3.bf16.msra.mxu0 %v1607_v47  ;;  %v1636_v47 = vld [vmem:[#allocation14 + $0x40] ss:$8 sps:$4 sm:$0xff]  }
  0xdc   :  { %1497 = vmatprep.subr.bf16.mxu0 %v1920_v23 }
 0x191   :  { %v253_v36 = vpop.f32.mrb[0].mxu0 }
 0x192   :  { %v254_v37 = vadd.f32 %v253_v36, %v188_v34  ;;  %v255_v38 = vpop.f32.mrb[1].mxu0 }
 0x193   :  { %v256_v39 = vadd.f32 %v255_v38, %v192_v35  ;;  %v257_v40 = vpop.f32.mrb[2].mxu0  ;;  %v1624_v38 = vld [vmem:[#allocation14] ss:$8 sps:$4 sm:$0xff]  }
 0x194   :  { %v260_v41 = vmax.f32 %v254_v37, 0.0  ;;  %v258_v42 = vpop.f32.mrb[3].mxu0  ;;  %v1629_v40 = vld [vmem:[#allocation14 + $0x14] ss:$8 sps:$4 sm:$0xff]  }
 0x195   :  { %v261_v43 = vmax.f32 %v256_v39, 0.0  ;;  %v1632_v42 = vld [vmem:[#allocation14 + $0x24] ss:$8 sps:$4 sm:$0xff]  }
 0x196   :  { %v262_v45 = vpack.c.bf16 %v260_v41, %v260_v41  ;;  %v1627_v41 = vld [vmem:[#allocation14 + $0x10] ss:$8 sps:$4 sm:$0xff]  }
 0x197   :  { %v263_v44 = vpack.c.bf16 %v261_v43, %v261_v43  ;;  %v1630_v43 = vld [vmem:[#allocation14 + $0x20] ss:$8 sps:$4 sm:$0xff]  }
 0x199   :  { %431 = vmatprep.mubr.bf16.mxu1 %v263_v44  ;;  %v1635_v44 = vld [vmem:[#allocation14 + $0x34] ss:$8 sps:$4 sm:$0xff]  }
 0x19a   :  { %432 = vmatmul.mubr.bf16.vlgmr.msra.gmra.mrb[0].mxu1 %v262_v45  ;;  %v1633_v45 = vld [vmem:[#allocation14 + $0x30] ss:$8 sps:$4 sm:$0xff]  }
 0x19b   :  { %1537 = vmatprep.mubr.msk.bf16.mxu1 %vm1921_vm1, %v1920_v23  ;;  %1530 = vmatpush3.bf16.msra.mxu1 %v1620_v14  ;;  %v1652_v14 = vld [vmem:[%s2377_s17 + $0x20] sm:$0xff]  }
 0x19c   :  { %1531 = vmatprep.subr.bf16.mxu1 %v1920_v23 }
 0x19f   :  { %1532 = vmatpush3.bf16.msra.mxu1 %v1621_v15  ;;  %v1653_v15 = vld [vmem:[%s2377_s17 + $0x28] sm:$0xff]  }
 0x1a0   :  { %1533 = vmatprep.subr.bf16.mxu1 %v1920_v23 }
 0x1a3   :  { %1534 = vmatpush3.bf16.msra.mxu1 %v1622_v24  ;;  %v851_v24 = vld [vmem:[%s2374_s14] sm:$0x3] }
 0x1a4   :  { %1535 = vmatprep.subr.bf16.mxu1 %v1920_v23 }
 0x1a7   :  { %1536 = vmatpush3.bf16.msra.mxu1 %v1623_v25  ;;  %v856_v25 = vrot.slane %v851_v24, %v187_v31 }
 0x1a8   :  { %943 = vmatprep.subr.bf16.mxu1 %v1626_v26 }
 0x26d   :  { %v1412_v48 = vpop.f32.mrb[0].mxu1 }
 0x26e   :  { %v1413_v50 = vpop.f32.mrb[1].mxu1 }
 0x26f   :  { %v1414_v51 = vadd.f32 %v1413_v50, %v1412_v48  ;;  %v1415_v52 = vpop.f32.mrb[2].mxu1  ;;  %v1641_v48 = vld [vmem:[#allocation14 + $0x54] ss:$8 sps:$4 sm:$0xff]   ;;  %v1644_v50 = vld [vmem:[#allocation14 + $0x64] ss:$8 sps:$4 sm:$0xff]  }
 0x270   :  { %v1416_v53 = vpop.f32.mrb[3].mxu1  ;;  %v1645_v52 = vld [vmem:[#allocation14 + $0x70] ss:$8 sps:$4 sm:$0xff]  }
 0x271   :  { %v434_v54 = vadd.f32 %v1414_v51, %v1307_v49  ;;  %v1639_v49 = vld [vmem:[#allocation14 + $0x50] ss:$8 sps:$4 sm:$0xff]   ;;  %v1647_v51 = vld [vmem:[#allocation14 + $0x74] ss:$8 sps:$4 sm:$0xff]   ;;  %v1656_v53 = vld [vmem:[#allocation16 + $0x40] sm:$0xff]  }
 0x273   :  { %v439_v55 = vmax.f32 %v434_v54, 0.0  ;;  %v1657_v54 = vld [vmem:[#allocation16] sm:$0xff]  }
 0x275   :  { %v440_v57 = vpack.c.bf16 %v439_v55, %v439_v55  ;;  %v1658_v55 = vld [vmem:[#allocation16 + $0x48] sm:$0xff]  }
 0x277   :  { %1494 = vmatmul.mubr.bf16.vlgmr.msra.gmra.mrb[4].mxu0 %v440_v57  ;;  %v1660_v57 = vld [vmem:[#allocation16 + $0x50] sm:$0xff]  }
 0x278   :  { %1498 = vmatpush3.bf16.msra.mxu0 %v1608_v56  ;;  %1505 = vmatprep.mubr.msk.bf16.mxu0 %vm1921_vm1, %v1920_v23  ;;  %v1659_v56 = vld [vmem:[#allocation16 + $0x8] sm:$0xff]  }
 0x279   :  { %1499 = vmatprep.subr.bf16.mxu0 %v1920_v23 }
 0x27c   :  { %1500 = vmatpush3.bf16.msra.mxu0 %v1609_v58  ;;  %v1661_v58 = vld [vmem:[#allocation16 + $0x10] sm:$0xff]  }
 0x27d   :  { %1501 = vmatprep.subr.bf16.mxu0 %v1920_v23 }
 0x280   :  { %1502 = vmatpush3.bf16.msra.mxu0 %v1610_v59  ;;  %v1662_v59 = vld [vmem:[#allocation16 + $0x58] sm:$0xff]  }
 0x281   :  { %1503 = vmatprep.subr.bf16.mxu0 %v1920_v23 }
 0x284   :  { %1504 = vmatpush3.bf16.msra.mxu0 %v1611_v60  ;;  %v1663_v60 = vld [vmem:[#allocation16 + $0x18] sm:$0xff]  }
 0x285   :  { %1509 = vmatprep.subr.bf16.mxu0 %v1920_v23 }
 0x34a   :  { %v546_v62 = vpop.f32.mrb[4].mxu0 }
 0x34b   :  { %v547_v63 = vadd.f32 %v1324_v61, %v546_v62  ;;  %v1495_v1 = vpop.f32.mrb[5].mxu0  ;;  %v1664_v61 = vld [vmem:[#allocation16 + $0x60] sm:$0xff]  }
 0x34c   :  { %v549_v2 = vpop.f32.mrb[6].mxu0  ;;  %v1665_v62 = vld [vmem:[#allocation16 + $0x20] sm:$0xff]   ;;  %v1667_v1 = vld [vmem:[#allocation16 + $0x28] sm:$0xff]  }
 0x34d   :  { %v552_v3 = vmax.f32 %v547_v63, 0.0  ;;  %v1496_v4 = vpop.f32.mrb[7].mxu0  ;;  %v1666_v63 = vld [vmem:[#allocation16 + $0x68] sm:$0xff]   ;;  %v1348_v2 = vld [vmem:[%s2372_s12] ss:$0 sm:$0xff] }
 0x34f   :  { %v553_v6 = vpack.c.bf16 %v552_v3, %v552_v3 }
 0x351   :  { %1506 = vmatmul.mubr.msk.bf16.vlgmr.msra.gmra.mrb[8].mxu0 %vm593_vm2, %v553_v6 }
 0x352   :  { %1510 = vmatpush3.bf16.msra.mxu0 %v1612_v5  ;;  %1525 = vmatprep.mubr.msk.bf16.mxu0 %vm1921_vm1, %v1920_v23 }
 0x353   :  { %1511 = vmatprep.subr.bf16.mxu0 %v1920_v23 }
 0x356   :  { %1512 = vmatpush3.bf16.msra.mxu0 %v1613_v7 }
 0x357   :  { %1513 = vmatprep.subr.bf16.mxu0 %v1920_v23 }
 0x35a   :  { %1514 = vmatpush3.bf16.msra.mxu0 %v1614_v8 }
 0x35b   :  { %1515 = vmatprep.subr.bf16.mxu0 %v1920_v23 }
 0x35e   :  { %1516 = vmatpush3.bf16.msra.mxu0 %v1615_v9  ;;  %v1648_v9 = vld [vmem:[%s2377_s17] sm:$0xff]  }
 0x35f   :  { %1517 = vmatprep.subr.bf16.mxu0 %v1920_v23 }
 0x362   :  { %1518 = vmatpush3.bf16.msra.mxu0 %v1616_v10 }
 0x363   :  { %1519 = vmatprep.subr.bf16.mxu0 %v1920_v23 }
 0x366   :  { %1520 = vmatpush3.bf16.msra.mxu0 %v1617_v11  ;;  %v1649_v11 = vld [vmem:[%s2377_s17 + $0x8] sm:$0xff]  }
 0x367   :  { %1521 = vmatprep.subr.bf16.mxu0 %v1920_v23 }
 0x36a   :  { %1522 = vmatpush3.bf16.msra.mxu0 %v1618_v12  ;;  %v1650_v12 = vld [vmem:[%s2377_s17 + $0x10] sm:$0xff]  }
 0x36b   :  { %1523 = vmatprep.subr.bf16.mxu0 %v1920_v23 }
 0x36e   :  { %1524 = vmatpush3.bf16.msra.mxu0 %v1619_v13  ;;  %v1651_v13 = vld [vmem:[%s2377_s17 + $0x18] sm:$0xff]  }
 0x36f   :  { %1446 = vmatprep.subr.bf16.mxu0 %v1656_v53 }
 0x424   :  { %v631_v17 = vpop.f32.mrb[8].mxu0 }
 0x425   :  { %v632_v18 = vadd.f32 %v1333_v16, %v631_v17  ;;  %v1507_v19 = vpop.f32.mrb[9].mxu0  ;;  %v1654_v16 = vld [vmem:[%s2377_s17 + $0x30] sm:$0xff]   ;;  %v1655_v17 = vld [vmem:[%s2377_s17 + $0x38] sm:$0xff]  }
 0x426   :  { %v634_v20 = vpop.f32.mrb[10].mxu0  ;;  %v1669_v19 = vld [vmem:[#allocation16 + $0x30] sm:$0xff]  }
 0x427   :  { %v2287_v21 = vpack.c.bf16 %v632_v18, %v632_v18  ;;  %v1508_v22 = vpop.f32.mrb[11].mxu0  ;;  %v1668_v18 = vld [vmem:[#allocation16 + $0x70] sm:$0xff]   ;;  %v1670_v20 = vld [vmem:[#allocation16 + $0x78] sm:$0xff]  }
 0x428   :  { %v1671_v22 = vld [vmem:[#allocation16 + $0x38] sm:$0xff]  }
 0x429   :  { %1526 = vmatmul.mubr.bf16.vlgmr.msra.gmra.mrb[12].mxu0 %v2287_v21 }
 0x42a   :  { %1447 = vmatpush3.bf16.msra.mxu0 %v1657_v54 }
 0x42b   :  { %1448 = vmatprep.subr.bf16.mxu0 %v1658_v55 }
 0x42e   :  { %1449 = vmatpush3.bf16.msra.mxu0 %v1659_v56 }
 0x42f   :  { %1450 = vmatprep.subr.bf16.mxu0 %v1660_v57 }
 0x432   :  { %1451 = vmatpush3.bf16.msra.mxu0 %v1661_v58 }
 0x433   :  { %1452 = vmatprep.subr.bf16.mxu0 %v1662_v59 }
 0x436   :  { %1453 = vmatpush3.bf16.msra.mxu0 %v1663_v60 }
 0x437   :  { %1454 = vmatprep.subr.bf16.mxu0 %v1664_v61 }
 0x43a   :  { %1455 = vmatpush3.bf16.msra.mxu0 %v1665_v62 }
 0x43b   :  { %1456 = vmatprep.subr.bf16.mxu0 %v1666_v63 }
 0x43e   :  { %1457 = vmatpush3.bf16.msra.mxu0 %v1667_v1 }
 0x43f   :  { %1458 = vmatprep.subr.bf16.mxu0 %v1668_v18 }
 0x442   :  { %1459 = vmatpush3.bf16.msra.mxu0 %v1669_v19 }
 0x443   :  { %1460 = vmatprep.subr.bf16.mxu0 %v1670_v20 }
 0x446   :  { %1461 = vmatpush3.bf16.msra.mxu0 %v1671_v22 }
 0x4fc   :  { %v743_v28 = vpop.f32.mrb[12].mxu0 }
 0x4fd   :  { %v744_v32 = vadd.f32 %v1339_v27, %v743_v28  ;;  %v1527_v34 = vpop.f32.mrb[13].mxu0 }
 0x4fe   :  { %v746_v35 = vpop.f32.mrb[14].mxu0 }
 0x4ff   :  { %v749_v36 = vmax.f32 %v744_v32, 0.0  ;;  %v1528_v37 = vpop.f32.mrb[15].mxu0 }
 0x501   :  { %v750_v39 = vpack.c.bf16 %v749_v36, %v749_v36 }
 0x503   :  { %1538 = vmatmul.mubr.msk.bf16.vlgmr.msra.gmra.mrb[4].mxu1 %vm593_vm2, %v750_v39 }
 0x504   :  { %944 = vmatpush1.bf16.msra.mxu1 %v1624_v38  ;;  %975 = vmatprep.mubr.bf16.mxu1 %v1919_v0  ;;  %v1642_v0 = vld [vmem:[#allocation14 + $0x60] ss:$8 sps:$4 sm:$0xff]  }
 0x505   :  { %945 = vmatprep.subr.bf16.mxu1 %v1629_v40 }
 0x508   :  { %946 = vmatpush1.bf16.msra.mxu1 %v1627_v41 }
 0x509   :  { %947 = vmatprep.subr.bf16.mxu1 %v1632_v42 }
 0x50c   :  { %948 = vmatpush1.bf16.msra.mxu1 %v1630_v43 }
 0x50d   :  { %949 = vmatprep.subr.bf16.mxu1 %v1635_v44  ;;  %v1279_v44 = vand.u32 127, %v185_v29 }
 0x50f   :  { %vm1280_vm3 = vcmp.eq.s32.totalorder %v1279_v44, 32 }
 0x510   :  { %950 = vmatpush1.bf16.msra.mxu1 %v1633_v45 }
 0x511   :  { %951 = vmatprep.subr.bf16.mxu1 %v1638_v46 }
 0x514   :  { %952 = vmatpush1.bf16.msra.mxu1 %v1636_v47  ;;  %v1370_v47 = vld [vmem:[%s2394_s27] ss:$0 sm:$0xff] }
 0x515   :  { %953 = vmatprep.subr.bf16.mxu1 %v1641_v48 }
 0x518   :  { %954 = vmatpush1.bf16.msra.mxu1 %v1639_v49 }
 0x519   :  { %955 = vmatprep.subr.bf16.mxu1 %v1644_v50 }
 0x51c   :  { %956 = vmatpush1.bf16.msra.mxu1 %v1642_v0 }
 0x51d   :  { %957 = vmatprep.subr.bf16.mxu1 %v1647_v51 }
 0x520   :  { %958 = vmatpush1.bf16.msra.mxu1 %v1645_v52 }
 0x521   :  { %1541 = vmatprep.subr.bf16.mxu1 %v1920_v23 }
 0x5d6   :  { %v827_v3 = vpop.f32.mrb[4].mxu1 }
 0x5d7   :  { %v828_v4 = vadd.f32 %v1348_v2, %v827_v3  ;;  %v1539_v5 = vpop.f32.mrb[5].mxu1 }
 0x5d8   :  { %v830_v6 = vpop.f32.mrb[6].mxu1 }
 0x5d9   :  { %v833_v7 = vmax.f32 %v828_v4, 0.0  ;;  %v1540_v8 = vpop.f32.mrb[7].mxu1 }
 0x5db   :  { %v834_v10 = vpack.c.bf16 %v833_v7, %v833_v7 }
 0x5dd   :  { %976 = vmatmul.mubr.bf16.vlgmr.msra.gmra.mrb[8].mxu1 %v834_v10 }
 0x5de   :  { %1542 = vmatpush3.bf16.msra.mxu1 %v1648_v9  ;;  %1557 = vmatprep.mubr.msk.bf16.mxu1 %vm1921_vm1, %v1920_v23 }
 0x5df   :  { %1543 = vmatprep.subr.bf16.mxu1 %v1920_v23 }
 0x5e2   :  { %1544 = vmatpush3.bf16.msra.mxu1 %v1649_v11 }
 0x5e3   :  { %1545 = vmatprep.subr.bf16.mxu1 %v1920_v23 }
 0x5e6   :  { %1546 = vmatpush3.bf16.msra.mxu1 %v1650_v12 }
 0x5e7   :  { %1547 = vmatprep.subr.bf16.mxu1 %v1920_v23 }
 0x5ea   :  { %1548 = vmatpush3.bf16.msra.mxu1 %v1651_v13 }
 0x5eb   :  { %1549 = vmatprep.subr.bf16.mxu1 %v1920_v23 }
 0x5ee   :  { %1550 = vmatpush3.bf16.msra.mxu1 %v1652_v14 }
 0x5ef   :  { %1551 = vmatprep.subr.bf16.mxu1 %v1920_v23 }
 0x5f2   :  { %1552 = vmatpush3.bf16.msra.mxu1 %v1653_v15 }
 0x5f3   :  { %1553 = vmatprep.subr.bf16.mxu1 %v1920_v23 }
 0x5f6   :  { %1554 = vmatpush3.bf16.msra.mxu1 %v1654_v16 }
 0x5f7   :  { %1555 = vmatprep.subr.bf16.mxu1 %v1920_v23  ;;  %v860_v23 = vrot.slane %v851_v24, %v191_v33 }
 0x5fa   :  { %1556 = vmatpush3.bf16.msra.mxu1 %v1655_v17 }
 0x5fd   :  { %1558 = vmatmul.mubr.bf16.vlgmr.msra.gmra.mrb[12].mxu1 %v2287_v21 }
 0x6b0   :  { %v977_v26 = vpop.f32.mrb[8].mxu1 }
 0x6b1   :  { %v978_v21 = vadd.f32 %v977_v26, %v856_v25  ;;  %v979_v27 = vpop.f32.mrb[9].mxu1 }
 0x6b2   :  { %v980_v28 = vadd.f32 %v979_v27, %v860_v23  ;;  %v981_v32 = vpop.f32.mrb[10].mxu1 }
 0x6b3   :  { %v984_v34 = vmax.f32 %v978_v21, 0.0  ;;  %v982_v35 = vpop.f32.mrb[11].mxu1 }
 0x6b4   :  { %v985_v36 = vmax.f32 %v980_v28, 0.0 }
 0x6b5   :  { %v986_v38 = vpack.c.bf16 %v984_v34, %v984_v34 }
 0x6b6   :  { %v987_v37 = vpack.c.bf16 %v985_v36, %v985_v36 }
 0x6b8   :  { %1155 = vmatprep.mubr.bf16.mxu0 %v987_v37 }
 0x6b9   :  { %1156 = vmatmul.mubr.bf16.vlgmr.msra.gmra.mrb[16].mxu0 %v986_v38 }
 0x6d0   :  { %v1268_v39 = vpop.f32.mrb[12].mxu1 }
 0x6d1   :  { %v1559_v40 = vpop.f32.mrb[13].mxu1  ;;  %v1269_v31 = vadd.f32 %v1387_v30, %v1268_v39 }
 0x6d2   :  { %v1271_v41 = vpop.f32.mrb[14].mxu1 }
 0x6d3   :  { %v1560_v42 = vpop.f32.mrb[15].mxu1  ;;  %v1274_v33 = vmul.f32 0.5, %v1269_v31 }
 0x6d5   :  { %1672 = vtanh.f32 %v1274_v33 }
 0x6df   :  { %v1673_v43 = vpop.eup %1672 }
 0x6e0   :  { %v1276_v45 = vadd.f32 1.0, %v1673_v43 }
 0x6e2   :  { %v1277_v51 = vmul.f32 0.5, %v1276_v45 }
 0x78c   :  { %v1462_v46 = vpop.f32.mrb[16].mxu0 }
 0x78d   :  { %v1463_v48 = vpop.f32.mrb[17].mxu0 }
 0x78e   :  { %v1464_v49 = vadd.f32 %v1463_v48, %v1462_v46  ;;  %v1465_v50 = vpop.f32.mrb[18].mxu0 }
 0x78f   :  { %v1466_v0 = vpop.f32.mrb[19].mxu0 }
 0x790   :  { %v1158_v52 = vadd.f32 %v1464_v49, %v1370_v47 }
 0x792   :  { %v1281_v53 = vsel %vm1280_vm3, %v1277_v51, %v1158_v52 }
 0x793   :  { %1282 = vst [vmem:[#allocation17] sm:$0xff] %v1281_v53 }
 0x794   :  { %1883 = shalt.err (!%p1880_p6)
}
 0x795   :  { %s2395_s22 = sld [smem:[#allocation29_spill]] }
 0x79b   :  { %s1884_s10 = scalar_lea.hbm %s2395_s22, 128 }
 0x79c   :  { %p1885_p7 = scmp.ne.s32.totalorder %s2395_s22, %s1884_s10  ;;  %p1888_p8 = scmp.lt.u32.totalorder %s1884_s10, %s2395_s22 }
 0x79e   :  { %p1890_p9 = pnand %p1888_p8, %p1885_p7 }
 0x7a0   :  { %1893 = shalt.err (!%p1890_p9)
}
 0x7a1   :  { %1292 = dma.vmem_to_hbm [thread:$0]  %s1290_s24, 128, %s2395_s22, [#allocation4]  }
 0x7a2   :  { %1904 = dma.done.wait [#allocation4], 128  }
 0x7a3   :  { %1905 = vsyncadd [#allocation4], 4294967168 }
 0x7a4   :  { %1296 = vsyncpa [#allocation3], 1 }
 0x7a5   :  { %1297 = vsyncpa [#allocation6], 1 }
 0x7a6   :  { %1298 = vsyncpa [#allocation9], 1 }
 0x7a7   :  { %1299 = vsyncpa [#allocation12], 1 }
 0x7a8   :  { %1300 = vsyncpa [#allocation15], 1 }
 0x7a9   :  { %1301 = vsyncpa [#allocation4], 1 }

</bundles_post_ra>
